<compile_context>
chip_gen: v6e
topology: v6e:2x2x1
jax: 0.10.0
libtpu: 0.0.40
codegen_flags: <defaults>
</compile_context>

<pallas_src>
import functools

import jax
import jax.numpy as jnp
from jax.experimental import pallas as pl
from jax.experimental.pallas import tpu as pltpu


# ---------------------------------------------------------------------------
# Kernel
# ---------------------------------------------------------------------------
def mlp_kernel(x_ref, w1_ref, b1_ref, w2_ref, b2_ref, w3_ref, b3_ref, o_ref):
    # MXU operands use the weight storage dtype (f32 or bf16); accumulate in f32.
    mxu_dtype = w1_ref.dtype

    # Layer 1: Linear + ReLU (bias add / ReLU stay in f32 on the VPU)
    h1 = jnp.dot(x_ref[...].astype(mxu_dtype), w1_ref[...],
                 preferred_element_type=jnp.float32)
    h1 = jnp.maximum(h1 + b1_ref[...], 0.0)

    # Layer 2: Linear + ReLU
    h2 = jnp.dot(h1.astype(mxu_dtype), w2_ref[...],
                 preferred_element_type=jnp.float32)
    h2 = jnp.maximum(h2 + b2_ref[...], 0.0)

    # Layer 3: Linear (no activation); output block is lane-dense (multiple of 128)
    out = jnp.dot(h2.astype(mxu_dtype), w3_ref[...],
                  preferred_element_type=jnp.float32) + b3_ref[...]
    o_ref[...] = out.astype(o_ref.dtype)


# ---------------------------------------------------------------------------
# Helpers
# ---------------------------------------------------------------------------
def _round_up(n, m):
    return ((n + m - 1) // m) * m


def _resident_spec(shape):
    """BlockSpec for a VMEM-resident operand (constant index map -> DMA'd once).

    pipeline_mode=pl.Buffered(1) drops the redundant second pipeline buffer,
    halving the operand's VMEM residency. Falls back if the installed Pallas
    BlockSpec has no pipeline_mode kwarg.
    """
    idx_map = lambda i: (0,) * len(shape)
    try:
        return pl.BlockSpec(shape, idx_map, pipeline_mode=pl.Buffered(1))
    except TypeError:
        return pl.BlockSpec(shape, idx_map)


def _batch_tiling(B, max_tile=512, min_split=128):
    """Pick (tb, bp): tile rows (multiple of 8) and padded batch (= grid * tb).

    - Large tiles (up to max_tile): per-grid-step overhead (~0.35us) amortised,
      streamed-tile efficiency ~85% of HBM roofline at 512 rows vs ~29% at 128.
    - Near-equal tiles keep round_up(B, tb) - B small (no near-empty tail tile).
    - >=2 grid steps for moderate/large batches so both v7x TensorCores get work.
    """
    bp8 = _round_up(max(B, 1), 8)
    n_tiles = -(-bp8 // max_tile)
    if n_tiles == 1 and bp8 >= 2 * min_split:
        n_tiles = 2
    tb = _round_up(-(-bp8 // n_tiles), 8)
    bp = n_tiles * tb
    return tb, bp


def pad_params(w1, b1, w2, b2, w3, b3, weight_dtype=jnp.float32):
    """Zero-pad params once at init so hidden/action dims are multiples of 128.

    Weights are [in, out] (already transposed vs. PyTorch), biases are [1, out].
    The input dim of w1 (state_dim) is intentionally NOT padded so x needs no
    per-call lane padding. Zero padding is exact for Linear -> ReLU chains.
    Weights may be stored in bf16 (MXU-native rate, half the HBM/VMEM traffic);
    biases stay f32 because the bias+ReLU path stays f32 in-kernel.
    """
    s, h = w1.shape
    a = w3.shape[1]
    hp, ap = _round_up(h, 128), _round_up(a, 128)

    w1p = jnp.pad(w1, ((0, 0), (0, hp - h))).astype(weight_dtype)
    b1p = jnp.pad(b1, ((0, 0), (0, hp - h)))
    w2p = jnp.pad(w2, ((0, hp - h), (0, hp - h))).astype(weight_dtype)
    b2p = jnp.pad(b2, ((0, 0), (0, hp - h)))
    w3p = jnp.pad(w3, ((0, hp - h), (0, ap - a))).astype(weight_dtype)
    b3p = jnp.pad(b3, ((0, 0), (0, ap - a)))
    return w1p, b1p, w2p, b2p, w3p, b3p


# ---------------------------------------------------------------------------
# Wrapper
# ---------------------------------------------------------------------------
@functools.partial(jax.jit, static_argnames=("action_dim", "max_batch_tile"))
def mlp_forward(x, w1p, b1p, w2p, b2p, w3p, b3p, *, action_dim, max_batch_tile=512):
    """x: [B, state_dim]; padded params from pad_params(). Returns [B, action_dim]."""
    B, s = x.shape
    hp = w1p.shape[1]
    ap = w3p.shape[1]

    tb, bp = _batch_tiling(B, max_tile=max_batch_tile)

    # Only the batch dim is padded (<= tb-1 rows); feature dim stays at state_dim.
    xp = jnp.pad(x, ((0, bp - B), (0, 0))) if bp != B else x

    # Derive the VMEM budget: weights counted twice (covers a fallback to default
    # double buffering) + double-buffered x/out tiles + f32 h1/h2 temporaries.
    w_bytes = jnp.dtype(w1p.dtype).itemsize
    weight_bytes = (s * hp + hp * hp + hp * ap) * w_bytes + 3 * hp * 4
    stream_bytes = 2 * tb * s * 4 + 2 * tb * ap * 4
    temp_bytes = 2 * tb * hp * 4
    need = 2 * weight_bytes + stream_bytes + temp_bytes + (4 << 20)
    vmem_limit = int(min(max(need, 16 << 20), 64 << 20))  # 64 MiB = v7x physical cap

    grid = (bp // tb,)
    out_padded = pl.pallas_call(
        mlp_kernel,
        out_shape=jax.ShapeDtypeStruct((bp, ap), x.dtype),
        grid_spec=pltpu.PrefetchScalarGridSpec(
            num_scalar_prefetch=0,
            grid=grid,
            in_specs=[
                pl.BlockSpec((tb, s), lambda i: (i, 0)),  # x tile streams per step
                _resident_spec((s, hp)),                   # weights/biases resident,
                _resident_spec((1, hp)),                   # single-buffered
                _resident_spec((hp, hp)),
                _resident_spec((1, hp)),
                _resident_spec((hp, ap)),
                _resident_spec((1, ap)),
            ],
            out_specs=pl.BlockSpec((tb, ap), lambda i: (i, 0)),
        ),
        compiler_params=pltpu.CompilerParams(
            dimension_semantics=("parallel",),
            vmem_limit_bytes=vmem_limit,
        ),
    )(xp, w1p, b1p, w2p, b2p, w3p, b3p)

    # Slice away batch + lane padding.
    return out_padded[:B, :action_dim]


# ---------------------------------------------------------------------------
# Init (mimics PyTorch nn.Linear default init, weight stored as [in, out])
# ---------------------------------------------------------------------------
def init_linear_params(key, in_features, out_features, dtype=jnp.float32):
    kw, kb = jax.random.split(key)
    bound = 1.0 / (in_features ** 0.5)
    w = jax.random.uniform(kw, (in_features, out_features), dtype, -bound, bound)
    b = jax.random.uniform(kb, (1, out_features), dtype, -bound, bound)
    return w, b


if __name__ == "__main__":
    # Toy sizes: this regime is pure launch + weight-DMA latency; the tiling /
    # buffering / dtype choices above are aimed at non-toy dims.
    state_dim, hidden_dim, action_dim = 16, 32, 8
    batch = 2

    key = jax.random.PRNGKey(0)
    k_x, k1, k2, k3 = jax.random.split(key, 4)

    x = jax.random.normal(k_x, (batch, state_dim), jnp.float32)
    w1, b1 = init_linear_params(k1, state_dim, hidden_dim)
    w2, b2 = init_linear_params(k2, hidden_dim, hidden_dim)
    w3, b3 = init_linear_params(k3, hidden_dim, action_dim)

    # Pure-JAX reference (unpadded params).
    h = jnp.maximum(x @ w1 + b1, 0.0)
    h = jnp.maximum(h @ w2 + b2, 0.0)
    ref = h @ w3 + b3

    # f32 path (exact).
    p32 = pad_params(w1, b1, w2, b2, w3, b3)
    out = jax.block_until_ready(mlp_forward(x, *p32, action_dim=action_dim))
    assert out.shape == (batch, action_dim)
    assert jnp.allclose(out, ref, atol=1e-5, rtol=1e-5)

    # bf16-weight / bf16-MXU-operand path (f32 accumulation) with looser tolerance.
    pbf = pad_params(w1, b1, w2, b2, w3, b3, weight_dtype=jnp.bfloat16)
    out_bf = jax.block_until_ready(mlp_forward(x, *pbf, action_dim=action_dim))
    assert out_bf.shape == (batch, action_dim)
    assert jnp.allclose(out_bf, ref, atol=5e-2, rtol=5e-2)

    print("KERNEL_OK")
</pallas_src>

<mosaic_0001>
module attributes {stable_mosaic.version = 11 : i64} {
  func.func @mlp_kernel(%arg0: i32, %arg1: memref<8x16xf32, #tpu.memory_space<vmem>>, %arg2: memref<16x128xf32, #tpu.memory_space<vmem>>, %arg3: memref<1x128xf32, #tpu.memory_space<vmem>>, %arg4: memref<128x128xf32, #tpu.memory_space<vmem>>, %arg5: memref<1x128xf32, #tpu.memory_space<vmem>>, %arg6: memref<128x128xf32, #tpu.memory_space<vmem>>, %arg7: memref<1x128xf32, #tpu.memory_space<vmem>>, %arg8: memref<8x128xf32, #tpu.memory_space<vmem>>) attributes {dimension_semantics = [#tpu.dimension_semantics<parallel>], iteration_bounds = array<i64: 1>, scalar_prefetch = 0 : i64, scratch_operands = 0 : i64, tpu.core_type = #tpu.core_type<tc>, window_params = [{transform_indices = @transform_0, window_bounds = array<i64: 8, 16>}, {pipeline_mode = #tpu.pipeline_mode<synchronous>, transform_indices = @transform_1, window_bounds = array<i64: 16, 128>}, {pipeline_mode = #tpu.pipeline_mode<synchronous>, transform_indices = @transform_2, window_bounds = array<i64: 1, 128>}, {pipeline_mode = #tpu.pipeline_mode<synchronous>, transform_indices = @transform_3, window_bounds = array<i64: 128, 128>}, {pipeline_mode = #tpu.pipeline_mode<synchronous>, transform_indices = @transform_4, window_bounds = array<i64: 1, 128>}, {pipeline_mode = #tpu.pipeline_mode<synchronous>, transform_indices = @transform_5, window_bounds = array<i64: 128, 128>}, {pipeline_mode = #tpu.pipeline_mode<synchronous>, transform_indices = @transform_6, window_bounds = array<i64: 1, 128>}, {transform_indices = @transform_7, window_bounds = array<i64: 8, 128>}]} {
    %c0 = arith.constant 0 : index
    %c0_0 = arith.constant 0 : index
    %0 = vector.load %arg1[%c0, %c0_0] : memref<8x16xf32, #tpu.memory_space<vmem>>, vector<8x16xf32>
    %c0_1 = arith.constant 0 : index
    %c0_2 = arith.constant 0 : index
    %1 = vector.load %arg2[%c0_1, %c0_2] : memref<16x128xf32, #tpu.memory_space<vmem>>, vector<16x128xf32>
    %cst = arith.constant dense<0.000000e+00> : vector<8x128xf32>
    %2 = tpu.matmul %0, %1, %cst {dimension_numbers = #tpu.dot_dimension_numbers<[1], [0], [0], [1], [0, 0, 1, 1], [], []>} : vector<8x16xf32>, vector<16x128xf32>, vector<8x128xf32> -> vector<8x128xf32>
    %c0_3 = arith.constant 0 : index
    %c0_4 = arith.constant 0 : index
    %3 = vector.load %arg3[%c0_3, %c0_4] : memref<1x128xf32, #tpu.memory_space<vmem>>, vector<1x128xf32>
    %4 = vector.broadcast %3 : vector<1x128xf32> to vector<8x128xf32>
    %5 = arith.addf %2, %4 : vector<8x128xf32>
    %cst_5 = arith.constant 0.000000e+00 : f32
    %6 = vector.broadcast %cst_5 : f32 to vector<8x128xf32>
    %7 = arith.maximumf %5, %6 : vector<8x128xf32>
    %c0_6 = arith.constant 0 : index
    %c0_7 = arith.constant 0 : index
    %8 = vector.load %arg4[%c0_6, %c0_7] : memref<128x128xf32, #tpu.memory_space<vmem>>, vector<128x128xf32>
    %cst_8 = arith.constant dense<0.000000e+00> : vector<8x128xf32>
    %9 = tpu.matmul %7, %8, %cst_8 {dimension_numbers = #tpu.dot_dimension_numbers<[1], [0], [0], [1], [0, 0, 1, 1], [], []>} : vector<8x128xf32>, vector<128x128xf32>, vector<8x128xf32> -> vector<8x128xf32>
    %c0_9 = arith.constant 0 : index
    %c0_10 = arith.constant 0 : index
    %10 = vector.load %arg5[%c0_9, %c0_10] : memref<1x128xf32, #tpu.memory_space<vmem>>, vector<1x128xf32>
    %11 = vector.broadcast %10 : vector<1x128xf32> to vector<8x128xf32>
    %12 = arith.addf %9, %11 : vector<8x128xf32>
    %cst_11 = arith.constant 0.000000e+00 : f32
    %13 = vector.broadcast %cst_11 : f32 to vector<8x128xf32>
    %14 = arith.maximumf %12, %13 : vector<8x128xf32>
    %c0_12 = arith.constant 0 : index
    %c0_13 = arith.constant 0 : index
    %15 = vector.load %arg6[%c0_12, %c0_13] : memref<128x128xf32, #tpu.memory_space<vmem>>, vector<128x128xf32>
    %cst_14 = arith.constant dense<0.000000e+00> : vector<8x128xf32>
    %16 = tpu.matmul %14, %15, %cst_14 {dimension_numbers = #tpu.dot_dimension_numbers<[1], [0], [0], [1], [0, 0, 1, 1], [], []>} : vector<8x128xf32>, vector<128x128xf32>, vector<8x128xf32> -> vector<8x128xf32>
    %c0_15 = arith.constant 0 : index
    %c0_16 = arith.constant 0 : index
    %17 = vector.load %arg7[%c0_15, %c0_16] : memref<1x128xf32, #tpu.memory_space<vmem>>, vector<1x128xf32>
    %18 = vector.broadcast %17 : vector<1x128xf32> to vector<8x128xf32>
    %19 = arith.addf %16, %18 : vector<8x128xf32>
    %c0_17 = arith.constant 0 : index
    %c0_18 = arith.constant 0 : index
    %20 = vector.load %arg8[%c0_17, %c0_18] : memref<8x128xf32, #tpu.memory_space<vmem>>, vector<8x128xf32>
    tpu.vector_store %arg8[%c0_17, %c0_18], %19 {strides = array<i32>} : memref<8x128xf32, #tpu.memory_space<vmem>>, vector<8x128xf32>,
    return
  }
  func.func @transform_0(%arg0: i32) -> (i32, i32) {
    %c0_i32 = arith.constant 0 : i32
    %c0_i32_0 = arith.constant 0 : i32
    return %arg0, %c0_i32 : i32, i32
  }
  func.func @transform_1(%arg0: i32) -> (i32, i32) {
    %c0_i32 = arith.constant 0 : i32
    %c0_i32_0 = arith.constant 0 : i32
    %c0_i32_1 = arith.constant 0 : i32
    return %c0_i32, %c0_i32_0 : i32, i32
  }
  func.func @transform_2(%arg0: i32) -> (i32, i32) {
    %c0_i32 = arith.constant 0 : i32
    %c0_i32_0 = arith.constant 0 : i32
    %c0_i32_1 = arith.constant 0 : i32
    return %c0_i32, %c0_i32_0 : i32, i32
  }
  func.func @transform_3(%arg0: i32) -> (i32, i32) {
    %c0_i32 = arith.constant 0 : i32
    %c0_i32_0 = arith.constant 0 : i32
    %c0_i32_1 = arith.constant 0 : i32
    return %c0_i32, %c0_i32_0 : i32, i32
  }
  func.func @transform_4(%arg0: i32) -> (i32, i32) {
    %c0_i32 = arith.constant 0 : i32
    %c0_i32_0 = arith.constant 0 : i32
    %c0_i32_1 = arith.constant 0 : i32
    return %c0_i32, %c0_i32_0 : i32, i32
  }
  func.func @transform_5(%arg0: i32) -> (i32, i32) {
    %c0_i32 = arith.constant 0 : i32
    %c0_i32_0 = arith.constant 0 : i32
    %c0_i32_1 = arith.constant 0 : i32
    return %c0_i32, %c0_i32_0 : i32, i32
  }
  func.func @transform_6(%arg0: i32) -> (i32, i32) {
    %c0_i32 = arith.constant 0 : i32
    %c0_i32_0 = arith.constant 0 : i32
    %c0_i32_1 = arith.constant 0 : i32
    return %c0_i32, %c0_i32_0 : i32, i32
  }
  func.func @transform_7(%arg0: i32) -> (i32, i32) {
    %c0_i32 = arith.constant 0 : i32
    %c0_i32_0 = arith.constant 0 : i32
    return %arg0, %c0_i32 : i32, i32
  }
}

</mosaic_0001>

<bundles_post_ra>
// kernel: mlp_forward.1
= control target key start
LH: loop header
LB: loop body
LE: loop exit
PB: predicated region body
PF: predicated region fallthrough
CT: control target
= control target key end

     0   :  { %12 = vsyncpa [#allocation3], 0  ;;  %s646_s0 = inlined_call_operand.vmem [shape: f32[8,16], index: 0, kind: input, shape index: {}]   ;;  %s647_s1 = inlined_call_operand.hbm [shape: f32[16,128], index: 1, kind: input, shape index: {}]   ;;  %s648_s2 = inlined_call_operand.vmem [shape: f32[1,128], index: 2, kind: input, shape index: {}]   ;;  %s649_s3 = inlined_call_operand.hbm [shape: f32[128,128], index: 3, kind: input, shape index: {}]   ;;  %s650_s4 = inlined_call_operand.vmem [shape: f32[1,128], index: 4, kind: input, shape index: {}]   ;;  %s651_s5 = inlined_call_operand.hbm [shape: f32[128,128], index: 5, kind: input, shape index: {}]   ;;  %s652_s6 = inlined_call_operand.vmem [shape: f32[1,128], index: 6, kind: input, shape index: {}]   ;;  %s653_s7 = inlined_call_operand.vmem [shape: f32[8,128], index: 7, kind: output, shape index: {}]  }
   0x1   :  { %13 = vsyncpa [#allocation5], 0  ;;  %s535_s24 = smov [#allocation4]   ;;  %s536_s26 = smov [#allocation2]  }
   0x2   :  { %s35_s25 = sshll.u32 %s535_s24, 4  ;;  %s21_s27 = sshll.u32 %s536_s26, 4  ;;  %s36_s25 = int_to_ptr.vmem [resolvable:$true] %s35_s25  ;;  %s22_s27 = int_to_ptr.vmem [resolvable:$true] %s21_s27 }
   0x3   :  { %s479_s28 = scalar_lea.vmem %s36_s25, 2048  ;;  %p484_p1 = scmp.lt.s32.totalorder %s36_s25, %s36_s25 }
   0x4   :  { %p480_p0 = scmp.ne.s32.totalorder %s36_s25, %s479_s28  ;;  %p485_p2 = scmp.lt.s32.totalorder %s479_s28, %s479_s28 }
   0x6   :  { %p486_p3 = por %p485_p2, %p484_p1 }
   0x8   :  { %p487_p4 = pnand %p486_p3, %p480_p0 }
   0xa   :  { %490 = shalt.err (!%p487_p4)
}
   0xb   :  { %s537_s29 = smov 128   ;;  %s538_s30 = smov 8  }
   0xc   :  { %41 = dma.hbm_to_vmem [thread:$0]  %s649_s3, 2048, %s36_s25, [#allocation5], %s537_s29, %s537_s29, %s538_s30  }
   0xd   :  { %s499_s10 = scalar_lea.vmem %s22_s27, 256  ;;  %p504_p6 = scmp.lt.s32.totalorder %s22_s27, %s22_s27 }
   0xe   :  { %p500_p5 = scmp.ne.s32.totalorder %s22_s27, %s499_s10  ;;  %p505_p7 = scmp.lt.s32.totalorder %s499_s10, %s499_s10 }
  0x10   :  { %p506_p8 = por %p505_p7, %p504_p6 }
  0x12   :  { %p507_p9 = pnand %p506_p8, %p500_p5 }
  0x14   :  { %510 = shalt.err (!%p507_p9)
}
  0x15   :  { %27 = dma.hbm_to_vmem [thread:$0]  %s647_s1, 256, %s22_s27, [#allocation3], %s537_s29, %s537_s29, %s538_s30  }
  0x16   :  { %s539_s13 = smov [#allocation6]  }
  0x17   :  { %s49_s14 = sshll.u32 %s539_s13, 4  ;;  %s50_s14 = int_to_ptr.vmem [resolvable:$true] %s49_s14 }
  0x18   :  { %s519_s15 = scalar_lea.vmem %s50_s14, 2048  ;;  %p524_p11 = scmp.lt.s32.totalorder %s50_s14, %s50_s14 }
  0x19   :  { %p520_p10 = scmp.ne.s32.totalorder %s50_s14, %s519_s15  ;;  %p525_p12 = scmp.lt.s32.totalorder %s519_s15, %s519_s15 }
  0x1b   :  { %p526_p13 = por %p525_p12, %p524_p11 }
  0x1d   :  { %p527_p0 = pnand %p526_p13, %p520_p10 }
  0x1f   :  { %530 = shalt.err (!%p527_p0)
}
  0x20   :  { %55 = dma.hbm_to_vmem [thread:$0]  %s651_s5, 2048, %s50_s14, [#allocation5], %s537_s29, %s537_s29, %s538_s30  }
  0x21   :  { %531 = dma.done.wait [#allocation3], 256  }
  0x22   :  { %532 = vsyncadd [#allocation3], 4294967040 }
  0x23   :  { %533 = dma.done.wait [#allocation5], 4096  }
  0x24   :  { %534 = vsyncadd [#allocation5], 4294963200  ;;  %v540_v0 = vmov 0.0   ;;  %vm541_vm0 = vmmov 0   ;;  %v69_v1 = vld [vmem:[#allocation2 + $0x8] sm:$0xff]  ;;  %v68_v2 = vld [vmem:[#allocation2] sm:$0xff] }
  0x25   :  { %387 = vmatprep.subr.mxu0 %v540_v0  ;;  %391 = vmatprep.mubr.msk.f32.mxu0 %vm541_vm0, %v540_v0  ;;  %v67_v3 = vld [vmem:[%s646_s0] sm:$0xff]  ;;  %vm77_vm1 = vcmask 130048   ;;  %v167_v4 = vld [vmem:[#allocation4 + $0x78] sm:$0xff]  ;;  %v165_v6 = vld [vmem:[#allocation4 + $0x68] sm:$0xff] }
  0x26   :  { %394 = vmatprep.subr.mxu1 %v540_v0  ;;  %426 = vmatprep.mubr.msk.f32.mxu1 %vm541_vm0, %v540_v0  ;;  %v166_v5 = vld [vmem:[#allocation4 + $0x70] sm:$0xff]  ;;  %v164_v7 = vld [vmem:[#allocation4 + $0x60] sm:$0xff]  ;;  %v163_v8 = vld [vmem:[#allocation4 + $0x58] sm:$0xff] }
  0x27   :  { %388 = vmatpush3.msra.mxu0 %v69_v1  ;;  %395 = vmatpush3.msra.mxu1 %v167_v4  ;;  %v162_v9 = vld [vmem:[#allocation4 + $0x50] sm:$0xff]  ;;  %v161_v10 = vld [vmem:[#allocation4 + $0x48] sm:$0xff]  ;;  %v160_v11 = vld [vmem:[#allocation4 + $0x40] sm:$0xff] }
  0x28   :  { %389 = vmatprep.subr.mxu0 %v540_v0  ;;  %396 = vmatprep.subr.mxu1 %v540_v0  ;;  %v159_v12 = vld [vmem:[#allocation4 + $0x38] sm:$0xff]  ;;  %v158_v13 = vld [vmem:[#allocation4 + $0x30] sm:$0xff]  ;;  %v157_v14 = vld [vmem:[#allocation4 + $0x28] sm:$0xff] }
  0x29   :  { %390 = vmatpush3.msra.mxu0 %v68_v2  ;;  %397 = vmatpush3.msra.mxu1 %v166_v5  ;;  %v156_v15 = vld [vmem:[#allocation4 + $0x20] sm:$0xff]  ;;  %v155_v16 = vld [vmem:[#allocation4 + $0x18] sm:$0xff]  ;;  %v154_v17 = vld [vmem:[#allocation4 + $0x10] sm:$0xff] }
  0x2a   :  { %392 = vmatmul.mubr.msk.f32.vlgmr.msra.gmra.mxu0 %vm77_vm1, %v67_v3  ;;  %398 = vmatprep.subr.mxu1 %v540_v0  ;;  %v153_v18 = vld [vmem:[#allocation4 + $0x8] sm:$0xff]  ;;  %v152_v19 = vld [vmem:[#allocation4] sm:$0xff]  ;;  %v261_v20 = vld [vmem:[#allocation6 + $0x78] sm:$0xff] }
  0x2b   :  { %429 = vmatprep.subr.mxu0 %v540_v0  ;;  %399 = vmatpush3.msra.mxu1 %v165_v6  ;;  %v260_v21 = vld [vmem:[#allocation6 + $0x70] sm:$0xff]  ;;  %v259_v22 = vld [vmem:[#allocation6 + $0x68] sm:$0xff]  ;;  %v258_v23 = vld [vmem:[#allocation6 + $0x60] sm:$0xff] }
  0x2c   :  { %461 = vmatprep.mubr.msk.f32.mxu0 %vm541_vm0, %v540_v0  ;;  %400 = vmatprep.subr.mxu1 %v540_v0  ;;  %v257_v24 = vld [vmem:[#allocation6 + $0x58] sm:$0xff]  ;;  %v256_v25 = vld [vmem:[#allocation6 + $0x50] sm:$0xff]  ;;  %v255_v26 = vld [vmem:[#allocation6 + $0x48] sm:$0xff] }
  0x2d   :  { %401 = vmatpush3.msra.mxu1 %v164_v7  ;;  %430 = vmatpush3.msra.mxu0 %v261_v20  ;;  %v254_v27 = vld [vmem:[#allocation6 + $0x40] sm:$0xff]  ;;  %v253_v28 = vld [vmem:[#allocation6 + $0x38] sm:$0xff]  ;;  %v252_v29 = vld [vmem:[#allocation6 + $0x30] sm:$0xff] }
  0x2e   :  { %402 = vmatprep.subr.mxu1 %v540_v0  ;;  %431 = vmatprep.subr.mxu0 %v540_v0  ;;  %v251_v30 = vld [vmem:[#allocation6 + $0x28] sm:$0xff]  ;;  %v250_v31 = vld [vmem:[#allocation6 + $0x20] sm:$0xff]  ;;  %v249_v32 = vld [vmem:[#allocation6 + $0x18] sm:$0xff] }
  0x2f   :  { %403 = vmatpush3.msra.mxu1 %v163_v8  ;;  %432 = vmatpush3.msra.mxu0 %v260_v21  ;;  %v346_v33 = vld [vmem:[%s648_s2] ss:$0 sm:$0xff]  ;;  %v247_v39 = vld [vmem:[#allocation6 + $0x8] sm:$0xff]  ;;  %v246_v40 = vld [vmem:[#allocation6] sm:$0xff] }
  0x30   :  { %404 = vmatprep.subr.mxu1 %v540_v0  ;;  %433 = vmatprep.subr.mxu0 %v540_v0  ;;  %v248_v38 = vld [vmem:[#allocation6 + $0x10] sm:$0xff] }
  0x31   :  { %405 = vmatpush3.msra.mxu1 %v162_v9  ;;  %434 = vmatpush3.msra.mxu0 %v259_v22  ;;  %v348_v41 = vld [vmem:[%s650_s4] ss:$0 sm:$0xff] }
  0x32   :  { %406 = vmatprep.subr.mxu1 %v540_v0  ;;  %435 = vmatprep.subr.mxu0 %v540_v0  ;;  %v349_v46 = vld [vmem:[%s652_s6] ss:$0 sm:$0xff] }
  0x33   :  { %407 = vmatpush3.msra.mxu1 %v161_v10  ;;  %436 = vmatpush3.msra.mxu0 %v258_v23 }
  0x34   :  { %408 = vmatprep.subr.mxu1 %v540_v0  ;;  %437 = vmatprep.subr.mxu0 %v540_v0 }
  0x35   :  { %409 = vmatpush3.msra.mxu1 %v160_v11  ;;  %438 = vmatpush3.msra.mxu0 %v257_v24 }
  0x36   :  { %410 = vmatprep.subr.mxu1 %v540_v0  ;;  %439 = vmatprep.subr.mxu0 %v540_v0 }
  0x37   :  { %411 = vmatpush3.msra.mxu1 %v159_v12  ;;  %440 = vmatpush3.msra.mxu0 %v256_v25 }
  0x38   :  { %412 = vmatprep.subr.mxu1 %v540_v0  ;;  %441 = vmatprep.subr.mxu0 %v540_v0 }
  0x39   :  { %413 = vmatpush3.msra.mxu1 %v158_v13  ;;  %442 = vmatpush3.msra.mxu0 %v255_v26 }
  0x3a   :  { %414 = vmatprep.subr.mxu1 %v540_v0  ;;  %443 = vmatprep.subr.mxu0 %v540_v0 }
  0x3b   :  { %415 = vmatpush3.msra.mxu1 %v157_v14  ;;  %444 = vmatpush3.msra.mxu0 %v254_v27 }
  0x3c   :  { %416 = vmatprep.subr.mxu1 %v540_v0  ;;  %445 = vmatprep.subr.mxu0 %v540_v0 }
  0x3d   :  { %417 = vmatpush3.msra.mxu1 %v156_v15  ;;  %446 = vmatpush3.msra.mxu0 %v253_v28 }
  0x3e   :  { %418 = vmatprep.subr.mxu1 %v540_v0  ;;  %447 = vmatprep.subr.mxu0 %v540_v0 }
  0x3f   :  { %419 = vmatpush3.msra.mxu1 %v155_v16  ;;  %448 = vmatpush3.msra.mxu0 %v252_v29 }
  0x40   :  { %420 = vmatprep.subr.mxu1 %v540_v0  ;;  %449 = vmatprep.subr.mxu0 %v540_v0 }
  0x41   :  { %421 = vmatpush3.msra.mxu1 %v154_v17  ;;  %450 = vmatpush3.msra.mxu0 %v251_v30 }
  0x42   :  { %422 = vmatprep.subr.mxu1 %v540_v0  ;;  %451 = vmatprep.subr.mxu0 %v540_v0 }
  0x43   :  { %423 = vmatpush3.msra.mxu1 %v153_v18  ;;  %452 = vmatpush3.msra.mxu0 %v250_v31 }
  0x44   :  { %424 = vmatprep.subr.mxu1 %v540_v0  ;;  %453 = vmatprep.subr.mxu0 %v540_v0 }
  0x45   :  { %425 = vmatpush3.msra.mxu1 %v152_v19  ;;  %454 = vmatpush3.msra.mxu0 %v249_v32 }
  0x46   :  { %455 = vmatprep.subr.mxu0 %v540_v0 }
  0x47   :  { %456 = vmatpush3.msra.mxu0 %v248_v38 }
  0x48   :  { %457 = vmatprep.subr.mxu0 %v540_v0 }
  0x49   :  { %458 = vmatpush3.msra.mxu0 %v247_v39 }
  0x4a   :  { %459 = vmatprep.subr.mxu0 %v540_v0 }
  0x4b   :  { %460 = vmatpush3.msra.mxu0 %v246_v40 }
  0xea   :  { %v147_v34 = vpop.f32.mrf.mxu0 }
  0xeb   :  { %v148_v35 = vadd.f32 %v346_v33, %v147_v34 }
  0xec   :  { %v393_v36 = vpop.f32.mrf.mxu0 }
  0xed   :  { %v151_v37 = vmax.f32 %v148_v35, 0.0 }
  0xef   :  { %427 = vmatmul.mubr.f32.vlgmr.msra.gmra.mxu1 %v151_v37 }
 0x1af   :  { %v241_v42 = vpop.f32.mrf.mxu1 }
 0x1b0   :  { %v242_v43 = vadd.f32 %v348_v41, %v241_v42 }
 0x1b1   :  { %v428_v44 = vpop.f32.mrf.mxu1 }
 0x1b2   :  { %v245_v45 = vmax.f32 %v242_v43, 0.0 }
 0x1b4   :  { %462 = vmatmul.mubr.f32.vlgmr.msra.gmra.mxu0 %v245_v45 }
 0x274   :  { %v335_v47 = vpop.f32.mrf.mxu0 }
 0x275   :  { %v336_v48 = vadd.f32 %v349_v46, %v335_v47 }
 0x276   :  { %v463_v49 = vpop.f32.mrf.mxu0 }
 0x277   :  { %339 = vst [vmem:[%s653_s7] sm:$0xff] %v336_v48 }
 0x278   :  { %344 = vsyncpa [#allocation3], 1 }
 0x279   :  { %345 = vsyncpa [#allocation5], 1 }

</bundles_post_ra>
